<compile_context>
chip_gen: v7x
topology: tpu7x:2x2x1
jax: 0.10.0
libtpu: 0.0.40
codegen_flags: <defaults>
</compile_context>

<pallas_src>
import jax
import jax.numpy as jnp
from jax import lax
from jax.experimental import pallas as pl
from jax.experimental.pallas import tpu as pltpu


def _round_up(x, m):
    return (x + m - 1) // m * m


def _aligned_attention_kernel(p_ref, q_ref, mask_ref, w_ref, b_ref, out_ref):
    TB, P, D = p_ref.shape
    _, Q, _ = q_ref.shape
    H = w_ref.shape[1]

    w = w_ref[...]                       # (D, H)  compute dtype
    b = b_ref[...]                       # (1, H)  float32

    # Fold the batch tile into the M dimension: one fat matmul per projection.
    p2 = p_ref[...].reshape(TB * P, D)
    q2 = q_ref[...].reshape(TB * Q, D)
    p_key = jnp.maximum(
        jnp.dot(p2, w, preferred_element_type=jnp.float32) + b, 0.0)   # (TB*P, H) f32
    q_key = jnp.maximum(
        jnp.dot(q2, w, preferred_element_type=jnp.float32) + b, 0.0)   # (TB*Q, H) f32

    # Batched scores: contract the hidden dim of both operands directly
    # (no explicit transpose), batch over the leading tile dim.
    pk = p_key.reshape(TB, P, H).astype(p_ref.dtype)
    qk = q_key.reshape(TB, Q, H).astype(q_ref.dtype)
    scores = lax.dot_general(
        pk, qk,
        dimension_numbers=(((2,), (2,)), ((0,), (0,))),
        preferred_element_type=jnp.float32)                            # (TB, P, Q) f32

    # Pad-token masking: mask==1 -> -inf (broadcast (TB,1,Q) over P).
    scores = jnp.where(mask_ref[...] != 0, -jnp.inf, scores)

    # Softmax over the question axis; denominator via the EUP reciprocal.
    m = jnp.max(scores, axis=-1, keepdims=True)
    e = jnp.exp(scores - m)
    s = jnp.sum(e, axis=-1, keepdims=True)
    out_ref[...] = (e * pl.reciprocal(s, approx=True)).astype(out_ref.dtype)


def aligned_attention(p, q, q_mask, w_t, bias, *,
                      compute_dtype=jnp.float32,
                      out_dtype=jnp.float32,
                      batch_tile=None):
    """p: [B,P,D], q: [B,Q,D], q_mask: [B,Q] bool (True = pad), w_t: [D,H], bias: [H]."""
    B, P, D = p.shape
    _, Q, _ = q.shape
    H = w_t.shape[1]

    # Lane-dense output: pad Q to a multiple of 128; sublane-friendly P.
    Qp = _round_up(Q, 128)
    Pp = _round_up(P, 8)

    itemsize = jnp.dtype(compute_dtype).itemsize
    if batch_tile is None:
        # Pack as many batches per grid step as fit a conservative VMEM budget
        # (double-buffered inputs/output + f32 intermediates). Keeps the kernel
        # well under v7x's smaller 64 MiB VMEM while amortizing per-step overhead.
        per_batch = (2 * itemsize * (Pp * D + Qp * D)        # p, q blocks (double-buffered)
                     + 2 * 4 * (Pp * Qp + Qp)                # out block + mask
                     + 4 * (Pp * H + Qp * H + 2 * Pp * Qp))  # f32 intermediates
        budget = 24 * 1024 * 1024
        batch_tile = max(1, min(B, budget // max(per_batch, 1)))
    TB = int(batch_tile)
    Bp = _round_up(B, TB)

    p_pad = jnp.pad(p.astype(compute_dtype), ((0, Bp - B), (0, Pp - P), (0, 0)))
    q_pad = jnp.pad(q.astype(compute_dtype), ((0, Bp - B), (0, Qp - Q), (0, 0)))

    # Padded question columns must be masked (1) -> zero probability, so the
    # softmax normalization over the real columns is unchanged. Padded batches
    # stay unmasked (0) to avoid all -inf rows; they are sliced off below.
    m_i32 = jnp.pad(q_mask.astype(jnp.int32), ((0, 0), (0, Qp - Q)), constant_values=1)
    m_i32 = jnp.pad(m_i32, ((0, Bp - B), (0, 0)), constant_values=0)
    m_i32 = m_i32.reshape(Bp, 1, Qp)

    w_c = w_t.astype(compute_dtype)                    # (D, H), MXU input dtype
    b_f32 = bias.astype(jnp.float32).reshape(1, H)     # bias/ReLU stay in f32

    out_full = pl.pallas_call(
        _aligned_attention_kernel,
        out_shape=jax.ShapeDtypeStruct((Bp, Pp, Qp), out_dtype),
        grid_spec=pltpu.PrefetchScalarGridSpec(
            num_scalar_prefetch=0,
            grid=(Bp // TB,),
            in_specs=[
                pl.BlockSpec((TB, Pp, D), lambda b: (b, 0, 0)),
                pl.BlockSpec((TB, Qp, D), lambda b: (b, 0, 0)),
                pl.BlockSpec((TB, 1, Qp), lambda b: (b, 0, 0)),
                # W / bias are grid-invariant (index_map pinned to block 0).
                # TODO(synk): single-buffer them (pipeline_mode=pl.Buffered(1))
                # to reclaim their duplicate VMEM on v7x once that path is safe.
                pl.BlockSpec((D, H), lambda b: (0, 0)),
                pl.BlockSpec((1, H), lambda b: (0, 0)),
            ],
            out_specs=pl.BlockSpec((TB, Pp, Qp), lambda b: (b, 0, 0)),
        ),
        compiler_params=pltpu.CompilerParams(
            dimension_semantics=("parallel",),
            vmem_limit_bytes=48 * 1024 * 1024),
    )(p_pad, q_pad, m_i32, w_c, b_f32)

    return out_full[:B, :P, :Q]


def aligned_attention_ref(p, q, q_mask, w_t, bias):
    """Pure-JAX reference matching the PyTorch forward."""
    p_key = jax.nn.relu(p @ w_t + bias)
    q_key = jax.nn.relu(q @ w_t + bias)
    scores = jnp.einsum("bpd,bqd->bpq", p_key, q_key)
    scores = jnp.where(q_mask[:, None, :], -jnp.inf, scores)
    return jax.nn.softmax(scores, axis=2)


if __name__ == "__main__":
    # Small shapes consistent with the module.
    B, p_len, q_len = 2, 16, 8
    p_dim, c_dim = 32, 16
    D = p_dim + c_dim          # linear input dim
    H = p_dim                  # linear output dim

    key = jax.random.PRNGKey(0)
    kp, kq, kw, kb = jax.random.split(key, 4)

    p = jax.random.normal(kp, (B, p_len, D), dtype=jnp.float32)
    q = jax.random.normal(kq, (B, q_len, D), dtype=jnp.float32)

    # Deterministic parameter init (nn.Linear(p_dim + c_dim, p_dim)).
    bound = 1.0 / (D ** 0.5)
    w = jax.random.uniform(kw, (H, D), minval=-bound, maxval=bound,
                           dtype=jnp.float32)      # PyTorch layout (out, in)
    bias = jax.random.uniform(kb, (H,), minval=-bound, maxval=bound,
                              dtype=jnp.float32)
    w_t = w.T                                       # (D, H) for x @ W^T

    # Question mask: True = pad. Pad the tail of each question.
    lengths = jnp.array([6, 5], dtype=jnp.int32)
    q_mask = jnp.arange(q_len)[None, :] >= lengths[:, None]   # (B, q_len) bool

    ref = aligned_attention_ref(p, q, q_mask, w_t, bias)

    # f32 path: near-exact (only the approx reciprocal deviates slightly).
    out_f32 = jax.block_until_ready(
        aligned_attention(p, q, q_mask, w_t, bias, compute_dtype=jnp.float32))
    if not jnp.allclose(out_f32, ref, atol=5e-3, rtol=5e-3):
        raise AssertionError("f32 Pallas kernel does not match reference")

    # bf16 MXU path (the v6e/v7x fast path): loose sanity check on probabilities.
    out_bf16 = jax.block_until_ready(
        aligned_attention(p, q, q_mask, w_t, bias, compute_dtype=jnp.bfloat16))
    if float(jnp.max(jnp.abs(out_bf16 - ref))) > 0.1:
        raise AssertionError("bf16 Pallas kernel deviates too much from reference")

    print("KERNEL_OK")
</pallas_src>

<mosaic_0001>
module attributes {stable_mosaic.version = 11 : i64} {
  func.func @_aligned_attention_kernel(%arg0: i32, %arg1: memref<2x16x48xf32, #tpu.memory_space<vmem>>, %arg2: memref<2x128x48xf32, #tpu.memory_space<vmem>>, %arg3: memref<2x1x128xi32, #tpu.memory_space<vmem>>, %arg4: memref<48x32xf32, #tpu.memory_space<vmem>>, %arg5: memref<1x32xf32, #tpu.memory_space<vmem>>, %arg6: memref<2x16x128xf32, #tpu.memory_space<vmem>>) attributes {dimension_semantics = [#tpu.dimension_semantics<parallel>], iteration_bounds = array<i64: 1>, scalar_prefetch = 0 : i64, scratch_operands = 0 : i64, tpu.core_type = #tpu.core_type<tc>, window_params = [{transform_indices = @transform_0, window_bounds = array<i64: 2, 16, 48>}, {transform_indices = @transform_1, window_bounds = array<i64: 2, 128, 48>}, {transform_indices = @transform_2, window_bounds = array<i64: 2, 1, 128>}, {pipeline_mode = #tpu.pipeline_mode<synchronous>, transform_indices = @transform_3, window_bounds = array<i64: 48, 32>}, {pipeline_mode = #tpu.pipeline_mode<synchronous>, transform_indices = @transform_4, window_bounds = array<i64: 1, 32>}, {transform_indices = @transform_5, window_bounds = array<i64: 2, 16, 128>}]} {
    %c0 = arith.constant 0 : index
    %c0_0 = arith.constant 0 : index
    %0 = vector.load %arg4[%c0, %c0_0] : memref<48x32xf32, #tpu.memory_space<vmem>>, vector<48x32xf32>
    %c0_1 = arith.constant 0 : index
    %c0_2 = arith.constant 0 : index
    %1 = vector.load %arg5[%c0_1, %c0_2] : memref<1x32xf32, #tpu.memory_space<vmem>>, vector<1x32xf32>
    %c0_3 = arith.constant 0 : index
    %c0_4 = arith.constant 0 : index
    %c0_5 = arith.constant 0 : index
    %2 = vector.load %arg1[%c0_3, %c0_4, %c0_5] : memref<2x16x48xf32, #tpu.memory_space<vmem>>, vector<2x16x48xf32>
    %3 = vector.shape_cast %2 : vector<2x16x48xf32> to vector<32x48xf32>
    %c0_6 = arith.constant 0 : index
    %c0_7 = arith.constant 0 : index
    %c0_8 = arith.constant 0 : index
    %4 = vector.load %arg2[%c0_6, %c0_7, %c0_8] : memref<2x128x48xf32, #tpu.memory_space<vmem>>, vector<2x128x48xf32>
    %5 = vector.shape_cast %4 : vector<2x128x48xf32> to vector<256x48xf32>
    %cst = arith.constant dense<0.000000e+00> : vector<32x32xf32>
    %6 = tpu.matmul %3, %0, %cst {dimension_numbers = #tpu.dot_dimension_numbers<[1], [0], [0], [1], [0, 0, 1, 1], [], []>} : vector<32x48xf32>, vector<48x32xf32>, vector<32x32xf32> -> vector<32x32xf32>
    %7 = vector.broadcast %1 : vector<1x32xf32> to vector<32x32xf32>
    %8 = arith.addf %6, %7 : vector<32x32xf32>
    %cst_9 = arith.constant 0.000000e+00 : f32
    %9 = vector.broadcast %cst_9 : f32 to vector<32x32xf32>
    %10 = arith.maximumf %8, %9 : vector<32x32xf32>
    %cst_10 = arith.constant dense<0.000000e+00> : vector<256x32xf32>
    %11 = tpu.matmul %5, %0, %cst_10 {dimension_numbers = #tpu.dot_dimension_numbers<[1], [0], [0], [1], [0, 0, 1, 1], [], []>} : vector<256x48xf32>, vector<48x32xf32>, vector<256x32xf32> -> vector<256x32xf32>
    %12 = vector.broadcast %1 : vector<1x32xf32> to vector<256x32xf32>
    %13 = arith.addf %11, %12 : vector<256x32xf32>
    %cst_11 = arith.constant 0.000000e+00 : f32
    %14 = vector.broadcast %cst_11 : f32 to vector<256x32xf32>
    %15 = arith.maximumf %13, %14 : vector<256x32xf32>
    %16 = vector.shape_cast %10 : vector<32x32xf32> to vector<2x16x32xf32>
    %17 = vector.shape_cast %15 : vector<256x32xf32> to vector<2x128x32xf32>
    %cst_12 = arith.constant dense<0.000000e+00> : vector<2x16x128xf32>
    %18 = tpu.matmul %16, %17, %cst_12 {dimension_numbers = #tpu.dot_dimension_numbers<[2], [2], [1], [1], [0, 0, 0, 1, 1, 1], [0], [0]>} : vector<2x16x32xf32>, vector<2x128x32xf32>, vector<2x16x128xf32> -> vector<2x16x128xf32>
    %c0_13 = arith.constant 0 : index
    %c0_14 = arith.constant 0 : index
    %c0_15 = arith.constant 0 : index
    %19 = vector.load %arg3[%c0_13, %c0_14, %c0_15] : memref<2x1x128xi32, #tpu.memory_space<vmem>>, vector<2x1x128xi32>
    %c0_i32 = arith.constant 0 : i32
    %20 = vector.broadcast %c0_i32 : i32 to vector<2x1x128xi32>
    %21 = arith.cmpi ne, %19, %20 : vector<2x1x128xi32>
    %cst_16 = arith.constant 0xFF800000 : f32
    %22 = vector.shape_cast %21 : vector<2x1x128xi1> to vector<2x1x128xi1>
    %23 = vector.broadcast %22 : vector<2x1x128xi1> to vector<2x16x128xi1>
    %24 = vector.broadcast %cst_16 : f32 to vector<2x16x128xf32>
    %25 = arith.select %23, %24, %18 : vector<2x16x128xi1>, vector<2x16x128xf32>
    %cst_17 = arith.constant dense<0xFF800000> : vector<2x16xf32>
    %26 = vector.multi_reduction <maximumf>, %25, %cst_17 [2] : vector<2x16x128xf32> to vector<2x16xf32>
    %27 = vector.shape_cast %26 : vector<2x16xf32> to vector<2x16x1xf32>
    %28 = vector.broadcast %27 : vector<2x16x1xf32> to vector<2x16x128xf32>
    %29 = arith.subf %25, %28 : vector<2x16x128xf32>
    %30 = math.exp %29 : vector<2x16x128xf32>
    %cst_18 = arith.constant dense<0.000000e+00> : vector<2x16xf32>
    %31 = vector.multi_reduction <add>, %30, %cst_18 [2] : vector<2x16x128xf32> to vector<2x16xf32>
    %32 = vector.shape_cast %31 : vector<2x16xf32> to vector<2x16x1xf32>
    %33 = tpu.reciprocal %32 {approx = true} : vector<2x16x1xf32> -> vector<2x16x1xf32>
    %34 = vector.broadcast %33 : vector<2x16x1xf32> to vector<2x16x128xf32>
    %35 = arith.mulf %30, %34 : vector<2x16x128xf32>
    %c0_19 = arith.constant 0 : index
    %c0_20 = arith.constant 0 : index
    %c0_21 = arith.constant 0 : index
    %36 = vector.load %arg6[%c0_19, %c0_20, %c0_21] : memref<2x16x128xf32, #tpu.memory_space<vmem>>, vector<2x16x128xf32>
    tpu.vector_store %arg6[%c0_19, %c0_20, %c0_21], %35 {strides = array<i32>} : memref<2x16x128xf32, #tpu.memory_space<vmem>>, vector<2x16x128xf32>,
    return
  }
  func.func @transform_0(%arg0: i32) -> (i32, i32, i32) {
    %c0_i32 = arith.constant 0 : i32
    %c0_i32_0 = arith.constant 0 : i32
    %c0_i32_1 = arith.constant 0 : i32
    return %arg0, %c0_i32, %c0_i32_0 : i32, i32, i32
  }
  func.func @transform_1(%arg0: i32) -> (i32, i32, i32) {
    %c0_i32 = arith.constant 0 : i32
    %c0_i32_0 = arith.constant 0 : i32
    %c0_i32_1 = arith.constant 0 : i32
    return %arg0, %c0_i32, %c0_i32_0 : i32, i32, i32
  }
  func.func @transform_2(%arg0: i32) -> (i32, i32, i32) {
    %c0_i32 = arith.constant 0 : i32
    %c0_i32_0 = arith.constant 0 : i32
    %c0_i32_1 = arith.constant 0 : i32
    return %arg0, %c0_i32, %c0_i32_0 : i32, i32, i32
  }
  func.func @transform_3(%arg0: i32) -> (i32, i32) {
    %c0_i32 = arith.constant 0 : i32
    %c0_i32_0 = arith.constant 0 : i32
    %c0_i32_1 = arith.constant 0 : i32
    return %c0_i32, %c0_i32_0 : i32, i32
  }
  func.func @transform_4(%arg0: i32) -> (i32, i32) {
    %c0_i32 = arith.constant 0 : i32
    %c0_i32_0 = arith.constant 0 : i32
    %c0_i32_1 = arith.constant 0 : i32
    return %c0_i32, %c0_i32_0 : i32, i32
  }
  func.func @transform_5(%arg0: i32) -> (i32, i32, i32) {
    %c0_i32 = arith.constant 0 : i32
    %c0_i32_0 = arith.constant 0 : i32
    %c0_i32_1 = arith.constant 0 : i32
    return %arg0, %c0_i32, %c0_i32_0 : i32, i32, i32
  }
}

</mosaic_0001>

<bundles_post_ra>
// kernel: tpu_custom_call.1
= control target key start
LH: loop header
LB: loop body
LE: loop exit
PB: predicated region body
PF: predicated region fallthrough
CT: control target
= control target key end

     0   :  { %vm70_vm0 = vcmask 392192   ;;  %s1668_s0 = inlined_call_operand.vmem [shape: f32[2,16,48], index: 0, kind: input, shape index: {}]   ;;  %s1669_s1 = inlined_call_operand.vmem [shape: f32[2,128,48], index: 1, kind: input, shape index: {}]   ;;  %s1670_s2 = inlined_call_operand.vmem [shape: s32[2,1,128], index: 2, kind: input, shape index: {}]   ;;  %s1671_s3 = inlined_call_operand.vmem [shape: f32[48,32], index: 3, kind: input, shape index: {}]   ;;  %s1672_s4 = inlined_call_operand.vmem [shape: f32[1,32], index: 4, kind: input, shape index: {}]   ;;  %s1673_s5 = inlined_call_operand.hbm [shape: f32[2,16,128], index: 5, kind: output, shape index: {}]  }
   0x1   :  { %v21_v0 = vld [vmem:[%s1671_s3] sm:$0xff]  ;;  %v22_v1 = vld [vmem:[%s1671_s3 + $0x8] sm:$0xff]  ;;  %v23_v2 = vld [vmem:[%s1671_s3 + $0x10] sm:$0xff] }
   0x2   :  { %v1165_v3 = vpack.c.bf16 %v22_v1, %v21_v0  ;;  %v24_v4 = vld [vmem:[%s1671_s3 + $0x18] sm:$0xff]  ;;  %v25_v6 = vld [vmem:[%s1671_s3 + $0x20] sm:$0xff]  ;;  %v26_v7 = vld [vmem:[%s1671_s3 + $0x28] sm:$0xff] }
   0x3   :  { %v1169_v5 = vpack.c.bf16 %v24_v4, %v23_v2  ;;  %v32_v8 = vld [vmem:[%s1669_s1] sm:$0xff]  ;;  %v1173_v9 = vpack.c.bf16 %v26_v7, %v25_v6  ;;  %v33_v11 = vld [vmem:[%s1669_s1 + $0x8] sm:$0xff]  ;;  %v34_v12 = vld [vmem:[%s1669_s1 + $0x10] sm:$0xff] }
   0x4   :  { %1178 = vmatprep.subr.bf16.mxu1 %v1165_v3  ;;  %1047 = vmatprep.mubr.msk.f32.mxu1 %vm70_vm0, %v32_v8  ;;  %v28_v10 = vld [vmem:[%s1668_s0] sm:$0xff]  ;;  %v29_v13 = vld [vmem:[%s1668_s0 + $0x8] sm:$0xff]  ;;  %v30_v14 = vld [vmem:[%s1668_s0 + $0x10] sm:$0xff] }
   0x5   :  { %1180 = vmatpush3.bf16.msra.mxu1 %v1165_v3  ;;  %1166 = vmatprep.subr.bf16.mxu0 %v1165_v3 }
   0x6   :  { %1182 = vmatprep.subr.bf16.mxu1 %v1169_v5  ;;  %1168 = vmatpush3.bf16.msra.mxu0 %v1165_v3 }
   0x7   :  { %1170 = vmatprep.subr.bf16.mxu0 %v1169_v5  ;;  %1029 = vmatprep.mubr.msk.f32.mxu0 %vm70_vm0, %v28_v10 }
   0x9   :  { %1184 = vmatpush3.bf16.msra.mxu1 %v1169_v5 }
   0xa   :  { %1186 = vmatprep.subr.bf16.mxu1 %v1173_v9  ;;  %1172 = vmatpush3.bf16.msra.mxu0 %v1169_v5 }
   0xb   :  { %1174 = vmatprep.subr.bf16.mxu0 %v1173_v9 }
   0xd   :  { %1188 = vmatpush3.bf16.msra.mxu1 %v1173_v9 }
   0xe   :  { %1176 = vmatpush3.bf16.msra.mxu0 %v1173_v9 }
   0xf   :  { %10 = vsyncpa [#allocation3], 0  ;;  %v35_v15 = vld [vmem:[%s1669_s1 + $0x18] sm:$0xff]  ;;  %v36_v16 = vld [vmem:[%s1669_s1 + $0x20] sm:$0xff]  ;;  %vm525_vm1 = vcmask 261120  }
  0x10   :  { %1048 = vmatmul.mubr.msk.f32.vlgmr.msra.gmra.mrb[0].mxu1 %vm70_vm0, %v33_v11  ;;  %v31_v17 = vld [vmem:[%s1668_s0 + $0x18] sm:$0xff]  ;;  %v37_v18 = vld [vmem:[%s1669_s1 + $0x28] sm:$0xff]  ;;  %v38_v19 = vld [vmem:[%s1669_s1 + $0x30] sm:$0xff] }
  0x11   :  { %1050 = vmatprep.mubr.msk.f32.mxu1 %vm70_vm0, %v34_v12  ;;  %1030 = vmatmul.mubr.msk.f32.vlgmr.msra.gmra.mrb[0].mxu0 %vm70_vm0, %v29_v13  ;;  %v39_v20 = vld [vmem:[%s1669_s1 + $0x38] sm:$0xff]  ;;  %v40_v21 = vld [vmem:[%s1669_s1 + $0x40] sm:$0xff]  ;;  %v41_v22 = vld [vmem:[%s1669_s1 + $0x48] sm:$0xff] }
  0x12   :  { %1032 = vmatprep.mubr.msk.f32.mxu0 %vm70_vm0, %v30_v14  ;;  %v42_v23 = vld [vmem:[%s1669_s1 + $0x50] sm:$0xff]  ;;  %v43_v24 = vld [vmem:[%s1669_s1 + $0x58] sm:$0xff]  ;;  %v44_v25 = vld [vmem:[%s1669_s1 + $0x60] sm:$0xff] }
  0x13   :  { %v45_v26 = vld [vmem:[%s1669_s1 + $0x68] sm:$0xff]  ;;  %v46_v27 = vld [vmem:[%s1669_s1 + $0x70] sm:$0xff]  ;;  %v47_v28 = vld [vmem:[%s1669_s1 + $0x78] sm:$0xff] }
  0x14   :  { %1051 = vmatmul.mubr.msk.f32.gmra.mrb[2].mxu1 %vm70_vm0, %v35_v15  ;;  %v48_v29 = vld [vmem:[%s1669_s1 + $0x80] sm:$0xff]  ;;  %v49_v30 = vld [vmem:[%s1669_s1 + $0x88] sm:$0xff]  ;;  %v50_v31 = vld [vmem:[%s1669_s1 + $0x90] sm:$0xff] }
  0x15   :  { %1053 = vmatprep.mubr.msk.f32.mxu1 %vm70_vm0, %v36_v16  ;;  %1033 = vmatmul.mubr.msk.f32.gmra.mrb[2].mxu0 %vm70_vm0, %v31_v17  ;;  %v51_v32 = vld [vmem:[%s1669_s1 + $0x98] sm:$0xff]  ;;  %v52_v33 = vld [vmem:[%s1669_s1 + $0xa0] sm:$0xff]  ;;  %v53_v34 = vld [vmem:[%s1669_s1 + $0xa8] sm:$0xff] }
  0x16   :  { %v54_v35 = vld [vmem:[%s1669_s1 + $0xb0] sm:$0xff]  ;;  %v55_v36 = vld [vmem:[%s1669_s1 + $0xb8] sm:$0xff]  ;;  %v56_v37 = vld [vmem:[%s1669_s1 + $0xc0] sm:$0xff] }
  0x17   :  { %v57_v38 = vld [vmem:[%s1669_s1 + $0xc8] sm:$0xff]  ;;  %v58_v39 = vld [vmem:[%s1669_s1 + $0xd0] sm:$0xff]  ;;  %v59_v40 = vld [vmem:[%s1669_s1 + $0xd8] sm:$0xff] }
  0x18   :  { %1054 = vmatmul.mubr.msk.f32.gmra.mrb[4].mxu1 %vm70_vm0, %v37_v18  ;;  %v60_v41 = vld [vmem:[%s1669_s1 + $0xe0] sm:$0xff]  ;;  %v61_v42 = vld [vmem:[%s1669_s1 + $0xe8] sm:$0xff]  ;;  %v62_v43 = vld [vmem:[%s1669_s1 + $0xf0] sm:$0xff] }
  0x19   :  { %1056 = vmatprep.mubr.msk.f32.mxu1 %vm70_vm0, %v38_v19  ;;  %v63_v44 = vld [vmem:[%s1669_s1 + $0xf8] sm:$0xff]  ;;  %v1528_v45 = vld [vmem:[%s1672_s4] ss:$0 sm:$0xff]  ;;  %vm1539_vm2 = vmpackc.low %vm525_vm1, %vm525_vm1 }
  0x1c   :  { %1057 = vmatmul.mubr.msk.f32.gmra.mrb[6].mxu1 %vm70_vm0, %v39_v20 }
  0x1d   :  { %1059 = vmatprep.mubr.msk.f32.mxu1 %vm70_vm0, %v40_v21 }
  0x20   :  { %1060 = vmatmul.mubr.msk.f32.gmra.mrb[8].mxu1 %vm70_vm0, %v41_v22 }
  0x21   :  { %1062 = vmatprep.mubr.msk.f32.mxu1 %vm70_vm0, %v42_v23 }
  0x24   :  { %1063 = vmatmul.mubr.msk.f32.gmra.mrb[10].mxu1 %vm70_vm0, %v43_v24 }
  0x25   :  { %1065 = vmatprep.mubr.msk.f32.mxu1 %vm70_vm0, %v44_v25 }
  0x28   :  { %1066 = vmatmul.mubr.msk.f32.gmra.mrb[12].mxu1 %vm70_vm0, %v45_v26 }
  0x29   :  { %1068 = vmatprep.mubr.msk.f32.mxu1 %vm70_vm0, %v46_v27 }
  0x2c   :  { %1069 = vmatmul.mubr.msk.f32.gmra.mrb[14].mxu1 %vm70_vm0, %v47_v28 }
  0x2d   :  { %1071 = vmatprep.mubr.msk.f32.mxu1 %vm70_vm0, %v48_v29 }
  0x30   :  { %1072 = vmatmul.mubr.msk.f32.gmra.mrb[16].mxu1 %vm70_vm0, %v49_v30 }
  0x31   :  { %1074 = vmatprep.mubr.msk.f32.mxu1 %vm70_vm0, %v50_v31 }
  0x34   :  { %1075 = vmatmul.mubr.msk.f32.gmra.mrb[18].mxu1 %vm70_vm0, %v51_v32 }
  0x35   :  { %1077 = vmatprep.mubr.msk.f32.mxu1 %vm70_vm0, %v52_v33 }
  0x38   :  { %1078 = vmatmul.mubr.msk.f32.gmra.mrb[20].mxu1 %vm70_vm0, %v53_v34 }
  0x39   :  { %1080 = vmatprep.mubr.msk.f32.mxu1 %vm70_vm0, %v54_v35 }
  0x3c   :  { %1081 = vmatmul.mubr.msk.f32.gmra.mrb[22].mxu1 %vm70_vm0, %v55_v36 }
  0x3d   :  { %1083 = vmatprep.mubr.msk.f32.mxu1 %vm70_vm0, %v56_v37 }
  0x40   :  { %1084 = vmatmul.mubr.msk.f32.gmra.mrb[24].mxu1 %vm70_vm0, %v57_v38 }
  0x41   :  { %1086 = vmatprep.mubr.msk.f32.mxu1 %vm70_vm0, %v58_v39 }
  0x44   :  { %1087 = vmatmul.mubr.msk.f32.gmra.mrb[26].mxu1 %vm70_vm0, %v59_v40 }
  0x45   :  { %1089 = vmatprep.mubr.msk.f32.mxu1 %vm70_vm0, %v60_v41 }
  0x48   :  { %1090 = vmatmul.mubr.msk.f32.gmra.mrb[28].mxu1 %vm70_vm0, %v61_v42 }
  0x49   :  { %1092 = vmatprep.mubr.msk.f32.mxu1 %vm70_vm0, %v62_v43 }
  0x4c   :  { %1093 = vmatmul.mubr.msk.f32.gmra.mrb[30].mxu1 %vm70_vm0, %v63_v44 }
  0xe3   :  { %v1049_v46 = vpop.f32.mrb[0].mxu1 }
  0xe4   :  { %v340_v47 = vadd.f32 %v1049_v46, %v1528_v45  ;;  %v334_v48 = vpop.f32.mrb[1].mxu1  ;;  %v1031_v49 = vpop.f32.mrb[0].mxu0 }
  0xe5   :  { %v335_v50 = vadd.f32 %v1528_v45, %v334_v48  ;;  %v1533_v51 = vadd.f32 %v1031_v49, %v1528_v45  ;;  %v149_v52 = vpop.f32.mrb[1].mxu0 }
  0xe6   :  { %v494_v53 = vmax.f32 %v340_v47, 0.0  ;;  %v150_v54 = vadd.f32 %v1528_v45, %v149_v52 }
  0xe7   :  { %v493_v55 = vmax.f32 %v335_v50, 0.0  ;;  %v1052_v56 = vpop.f32.mrb[2].mxu1 }
  0xe8   :  { %v350_v57 = vadd.f32 %v1052_v56, %v1528_v45  ;;  %v344_v58 = vpop.f32.mrb[3].mxu1  ;;  %v168_v60 = vmax.f32 %v150_v54, 0.0  ;;  %v1034_v61 = vpop.f32.mrb[2].mxu0 }
  0xe9   :  { %v1189_v62 = vpack.c.bf16 %v494_v53, %v493_v55  ;;  %v345_v63 = vadd.f32 %v1528_v45, %v344_v58  ;;  %v1545_v0 = vadd.f32 %v1034_v61, %v1528_v45  ;;  %v159_v1 = vpop.f32.mrb[3].mxu0 }
  0xea   :  { %v496_v2 = vmax.f32 %v350_v57, 0.0  ;;  %1127 = vmatprep.mubr.msk.f32.mxu0 %vm525_vm1, %v168_v60  ;;  %v160_v3 = vadd.f32 %v1528_v45, %v159_v1 }
  0xeb   :  { %v495_v4 = vmax.f32 %v345_v63, 0.0  ;;  %v1055_v5 = vpop.f32.mrb[4].mxu1  ;;  %1191 = vmatprep.subr.msk.bf16.mxu0 %vm1539_vm2, %v1189_v62 }
  0xec   :  { %v360_v6 = vadd.f32 %v1055_v5, %v1528_v45  ;;  %v354_v7 = vpop.f32.mrb[5].mxu1  ;;  %1194 = vmatpush3.bf16.xpose.msk.msra.mxu0 %vm1539_vm2, %v1189_v62  ;;  %v170_v8 = vmax.f32 %v160_v3, 0.0 }
  0xed   :  { %v1195_v9 = vpack.c.bf16 %v496_v2, %v495_v4  ;;  %v355_v10 = vadd.f32 %v1528_v45, %v354_v7 }
  0xee   :  { %v498_v11 = vmax.f32 %v360_v6, 0.0  ;;  %1162 = vmatprep.mubr.msk.f32.mxu1 %vm525_vm1, %v170_v8 }
  0xef   :  { %v497_v12 = vmax.f32 %v355_v10, 0.0  ;;  %v1058_v13 = vpop.f32.mrb[6].mxu1  ;;  %1197 = vmatprep.subr.msk.bf16.mxu0 %vm1539_vm2, %v1195_v9 }
  0xf0   :  { %v370_v14 = vadd.f32 %v1058_v13, %v1528_v45  ;;  %v364_v15 = vpop.f32.mrb[7].mxu1 }
  0xf1   :  { %v1201_v16 = vpack.c.bf16 %v498_v11, %v497_v12  ;;  %v365_v17 = vadd.f32 %v1528_v45, %v364_v15 }
  0xf2   :  { %v500_v18 = vmax.f32 %v370_v14, 0.0 }
  0xf3   :  { %v499_v19 = vmax.f32 %v365_v17, 0.0  ;;  %v1061_v20 = vpop.f32.mrb[8].mxu1 }
  0xf4   :  { %v380_v21 = vadd.f32 %v1061_v20, %v1528_v45  ;;  %v374_v22 = vpop.f32.mrb[9].mxu1  ;;  %1200 = vmatpush3.bf16.xpose.msk.msra.mxu0 %vm1539_vm2, %v1195_v9 }
  0xf5   :  { %v1207_v23 = vpack.c.bf16 %v500_v18, %v499_v19  ;;  %v375_v24 = vadd.f32 %v1528_v45, %v374_v22  ;;  %1203 = vmatprep.subr.msk.bf16.mxu0 %vm1539_vm2, %v1201_v16 }
  0xf6   :  { %v502_v25 = vmax.f32 %v380_v21, 0.0 }
  0xf7   :  { %v501_v26 = vmax.f32 %v375_v24, 0.0  ;;  %v1064_v27 = vpop.f32.mrb[10].mxu1 }
  0xf8   :  { %v390_v28 = vadd.f32 %v1064_v27, %v1528_v45  ;;  %v384_v29 = vpop.f32.mrb[11].mxu1 }
  0xf9   :  { %v1213_v30 = vpack.c.bf16 %v502_v25, %v501_v26  ;;  %v385_v31 = vadd.f32 %v1528_v45, %v384_v29 }
  0xfa   :  { %v504_v32 = vmax.f32 %v390_v28, 0.0 }
  0xfb   :  { %v503_v33 = vmax.f32 %v385_v31, 0.0  ;;  %v1067_v34 = vpop.f32.mrb[12].mxu1 }
  0xfc   :  { %v400_v35 = vadd.f32 %v1067_v34, %v1528_v45  ;;  %v394_v36 = vpop.f32.mrb[13].mxu1  ;;  %1206 = vmatpush3.bf16.xpose.msk.msra.mxu0 %vm1539_vm2, %v1201_v16 }
  0xfd   :  { %v1219_v37 = vpack.c.bf16 %v504_v32, %v503_v33  ;;  %v395_v38 = vadd.f32 %v1528_v45, %v394_v36  ;;  %1209 = vmatprep.subr.msk.bf16.mxu0 %vm1539_vm2, %v1207_v23 }
  0xfe   :  { %v506_v39 = vmax.f32 %v400_v35, 0.0 }
  0xff   :  { %v505_v40 = vmax.f32 %v395_v38, 0.0  ;;  %v1070_v41 = vpop.f32.mrb[14].mxu1 }
 0x100   :  { %v410_v42 = vadd.f32 %v1070_v41, %v1528_v45  ;;  %v404_v43 = vpop.f32.mrb[15].mxu1 }
 0x101   :  { %v1225_v44 = vpack.c.bf16 %v506_v39, %v505_v40  ;;  %v405_v46 = vadd.f32 %v1528_v45, %v404_v43 }
 0x102   :  { %v508_v47 = vmax.f32 %v410_v42, 0.0 }
 0x103   :  { %v507_v48 = vmax.f32 %v405_v46, 0.0  ;;  %v1073_v49 = vpop.f32.mrb[16].mxu1  ;;  %v169_v46 = vmax.f32 %v1533_v51, 0.0  ;;  %v790_v51 = vlaneseq }
 0x104   :  { %v420_v50 = vadd.f32 %v1073_v49, %v1528_v45  ;;  %v414_v52 = vpop.f32.mrb[17].mxu1  ;;  %1212 = vmatpush3.bf16.xpose.msk.msra.mxu0 %vm1539_vm2, %v1207_v23 }
 0x105   :  { %v1579_v53 = vpack.c.bf16 %v508_v47, %v507_v48  ;;  %v415_v54 = vadd.f32 %v1528_v45, %v414_v52  ;;  %1215 = vmatprep.subr.msk.bf16.mxu0 %vm1539_vm2, %v1213_v30  ;;  %v784_v47 = vld [vmem:[%s1670_s2] sm:$0x1]  ;;  %v791_v48 = vshrl.u32 %v790_v51, 7 }
 0x106   :  { %v510_v55 = vmax.f32 %v420_v50, 0.0  ;;  %vm786_vm3 = vcmp.ne.s32.totalorder %v784_v47, 0  ;;  %v1329_v50 = vmov 0  }
 0x107   :  { %v509_v56 = vmax.f32 %v415_v54, 0.0  ;;  %v1076_v57 = vpop.f32.mrb[18].mxu1  ;;  %v792_v49 = vsub.s32 0, %v791_v48  ;;  %v788_v52 = vsel %vm786_vm3, 1, %v1329_v50 }
 0x108   :  { %v430_v58 = vadd.f32 %v1076_v57, %v1528_v45  ;;  %v424_v60 = vpop.f32.mrb[19].mxu1 }
 0x109   :  { %v1237_v61 = vpack.c.bf16 %v510_v55, %v509_v56  ;;  %v425_v62 = vadd.f32 %v1528_v45, %v424_v60 }
 0x10a   :  { %v512_v63 = vmax.f32 %v430_v58, 0.0 }
 0x10b   :  { %v511_v1 = vmax.f32 %v425_v62, 0.0  ;;  %1239 = vmatprep.subr.msk.bf16.mxu1 %vm1539_vm2, %v1237_v61  ;;  %v1079_v2 = vpop.f32.mrb[20].mxu1 }
 0x10c   :  { %1218 = vmatpush3.bf16.xpose.msk.msra.mxu0 %vm1539_vm2, %v1213_v30  ;;  %1242 = vmatpush3.bf16.xpose.msk.msra.mxu1 %vm1539_vm2, %v1237_v61  ;;  %v440_v3 = vadd.f32 %v1079_v2, %v1528_v45  ;;  %v434_v4 = vpop.f32.mrb[21].mxu1 }
 0x10d   :  { %v1243_v5 = vpack.c.bf16 %v512_v63, %v511_v1  ;;  %1221 = vmatprep.subr.msk.bf16.mxu0 %vm1539_vm2, %v1219_v37  ;;  %v435_v6 = vadd.f32 %v1528_v45, %v434_v4 }
 0x10e   :  { %v514_v7 = vmax.f32 %v440_v3, 0.0 }
 0x10f   :  { %1245 = vmatprep.subr.msk.bf16.mxu1 %vm1539_vm2, %v1243_v5  ;;  %v513_v8 = vmax.f32 %v435_v6, 0.0  ;;  %v1082_v9 = vpop.f32.mrb[22].mxu1 }
 0x110   :  { %v450_v10 = vadd.f32 %v1082_v9, %v1528_v45  ;;  %v444_v11 = vpop.f32.mrb[23].mxu1 }
 0x111   :  { %v1249_v12 = vpack.c.bf16 %v514_v7, %v513_v8  ;;  %v445_v13 = vadd.f32 %v1528_v45, %v444_v11 }
 0x112   :  { %v516_v14 = vmax.f32 %v450_v10, 0.0 }
 0x113   :  { %v515_v15 = vmax.f32 %v445_v13, 0.0  ;;  %v1085_v16 = vpop.f32.mrb[24].mxu1 }
 0x114   :  { %1224 = vmatpush3.bf16.xpose.msk.msra.mxu0 %vm1539_vm2, %v1219_v37  ;;  %1248 = vmatpush3.bf16.xpose.msk.msra.mxu1 %vm1539_vm2, %v1243_v5  ;;  %v460_v17 = vadd.f32 %v1085_v16, %v1528_v45  ;;  %v454_v18 = vpop.f32.mrb[25].mxu1 }
 0x115   :  { %1227 = vmatprep.subr.msk.bf16.mxu0 %vm1539_vm2, %v1225_v44  ;;  %1251 = vmatprep.subr.msk.bf16.mxu1 %vm1539_vm2, %v1249_v12  ;;  %v1255_v19 = vpack.c.bf16 %v516_v14, %v515_v15  ;;  %v455_v20 = vadd.f32 %v1528_v45, %v454_v18 }
 0x116   :  { %v518_v21 = vmax.f32 %v460_v17, 0.0 }
 0x117   :  { %v517_v22 = vmax.f32 %v455_v20, 0.0  ;;  %v1088_v23 = vpop.f32.mrb[26].mxu1 }
 0x118   :  { %v470_v24 = vadd.f32 %v1088_v23, %v1528_v45  ;;  %v464_v25 = vpop.f32.mrb[27].mxu1 }
 0x119   :  { %v1261_v26 = vpack.c.bf16 %v518_v21, %v517_v22  ;;  %v465_v27 = vadd.f32 %v1528_v45, %v464_v25 }
 0x11a   :  { %v520_v28 = vmax.f32 %v470_v24, 0.0 }
 0x11b   :  { %v519_v29 = vmax.f32 %v465_v27, 0.0  ;;  %v1091_v30 = vpop.f32.mrb[28].mxu1 }
 0x11c   :  { %1230 = vmatpush3.bf16.xpose.msk.msra.mxu0 %vm1539_vm2, %v1225_v44  ;;  %1254 = vmatpush3.bf16.xpose.msk.msra.mxu1 %vm1539_vm2, %v1249_v12  ;;  %v480_v31 = vadd.f32 %v1091_v30, %v1528_v45  ;;  %v474_v32 = vpop.f32.mrb[29].mxu1 }
 0x11d   :  { %1233 = vmatprep.subr.msk.bf16.mxu0 %vm1539_vm2, %v1579_v53  ;;  %1257 = vmatprep.subr.msk.bf16.mxu1 %vm1539_vm2, %v1255_v19  ;;  %v1267_v33 = vpack.c.bf16 %v520_v28, %v519_v29  ;;  %v475_v34 = vadd.f32 %v1528_v45, %v474_v32 }
 0x11e   :  { %v522_v35 = vmax.f32 %v480_v31, 0.0 }
 0x11f   :  { %v521_v36 = vmax.f32 %v475_v34, 0.0  ;;  %v1094_v37 = vpop.f32.mrb[30].mxu1 }
 0x120   :  { %v490_v38 = vadd.f32 %v1094_v37, %v1528_v45  ;;  %v484_v39 = vpop.f32.mrb[31].mxu1 }
 0x121   :  { %v1273_v40 = vpack.c.bf16 %v522_v35, %v521_v36  ;;  %v485_v41 = vadd.f32 %v1528_v45, %v484_v39  ;;  %v171_v45 = vmax.f32 %v1545_v0, 0.0  ;;  %v785_v0 = vld [vmem:[%s1670_s2 + $0x1] sm:$0x1]  ;;  %s1330_s2 = smov [#allocation2]  }
 0x122   :  { %v524_v42 = vmax.f32 %v490_v38, 0.0  ;;  %vm787_vm5 = vcmp.ne.s32.totalorder %v785_v0, 0  ;;  %s849_s26 = sshll.u32 %s1330_s2, 4  ;;  %s850_s26 = int_to_ptr.vmem [resolvable:$true] %s849_s26 }
 0x123   :  { %v523_v43 = vmax.f32 %v485_v41, 0.0  ;;  %v789_v57 = vsel %vm787_vm5, 1, %v1329_v50  ;;  %s1305_s0 = scalar_lea.vmem %s850_s26, 512  ;;  %p1310_p1 = scmp.lt.s32.totalorder %s850_s26, %s850_s26 }
 0x124   :  { %1236 = vmatpush3.bf16.xpose.msk.msra.mxu0 %vm1539_vm2, %v1579_v53  ;;  %1260 = vmatpush3.bf16.xpose.msk.msra.mxu1 %vm1539_vm2, %v1255_v19  ;;  %v793_v53 = vrot.slane %v788_v52, %v792_v49  ;;  %v797_v58 = vrot.slane %v789_v57, %v792_v49  ;;  %p1306_p0 = scmp.ne.s32.totalorder %s850_s26, %s1305_s0  ;;  %p1311_p2 = scmp.lt.s32.totalorder %s1305_s0, %s1305_s0 }
 0x125   :  { %1263 = vmatprep.subr.msk.bf16.mxu1 %vm1539_vm2, %v1261_v26  ;;  %v1279_v44 = vpack.c.bf16 %v524_v42, %v523_v43 }
 0x126   :  { %vm798_vm4 = vcmp.eq.s32.totalorder %v793_v53, 1  ;;  %vm799_vm6 = vcmp.eq.s32.totalorder %v797_v58, 1  ;;  %p1312_p3 = por %p1311_p2, %p1310_p1 }
 0x128   :  { %p1313_p4 = pnand %p1312_p3, %p1306_p0 }
 0x12b   :  { %1128 = vmatmul.mubr.msk.f32.vlgmr.msra.gmra.mrb[4].mxu0 %vm525_vm1, %v169_v46 }
 0x12c   :  { %1266 = vmatpush3.bf16.xpose.msk.msra.mxu1 %vm1539_vm2, %v1261_v26 }
 0x12d   :  { %1269 = vmatprep.subr.msk.bf16.mxu1 %vm1539_vm2, %v1267_v33 }
 0x134   :  { %1272 = vmatpush3.bf16.xpose.msk.msra.mxu1 %vm1539_vm2, %v1267_v33 }
 0x135   :  { %1275 = vmatprep.subr.msk.bf16.mxu1 %vm1539_vm2, %v1273_v40 }
 0x13c   :  { %1278 = vmatpush3.bf16.xpose.msk.msra.mxu1 %vm1539_vm2, %v1273_v40 }
 0x13d   :  { %1281 = vmatprep.subr.msk.bf16.mxu1 %vm1539_vm2, %v1279_v44 }
 0x144   :  { %1284 = vmatpush3.bf16.xpose.msk.msra.mxu1 %vm1539_vm2, %v1279_v44 }
 0x14b   :  { %1163 = vmatmul.mubr.msk.f32.vlgmr.msra.gmra.mrb[32].mxu1 %vm525_vm1, %v171_v45 }
 0x1fe   :  { %v1129_v54 = vpop.f32.mrb[4].mxu0 }
 0x1ff   :  { %v646_v55 = vpop.f32.mrb[5].mxu0  ;;  %v801_v56 = vsel %vm798_vm4, -inf, %v1129_v54 }
 0x200   :  { %v800_v59 = vsel %vm798_vm4, -inf, %v646_v55 }
 0x201   :  { %804 = vmax.xlane.f32.xlu0 %v800_v59 }
 0x205   :  { %806 = vmax.xlane.f32.xlu0 %v801_v56 }
 0x21e   :  { %v1164_v60 = vpop.f32.mrb[32].mxu1 }
 0x21f   :  { %v775_v61 = vpop.f32.mrb[33].mxu1  ;;  %v803_v63 = vsel %vm799_vm6, -inf, %v1164_v60 }
 0x220   :  { %v802_v62 = vsel %vm799_vm6, -inf, %v775_v61 }
 0x221   :  { %808 = vmax.xlane.f32.xlu1 %v802_v62 }
 0x225   :  { %810 = vmax.xlane.f32.xlu1 %v803_v63 }
 0x28e   :  { %v805_v1 = vpop.xlane.xlu0 %804 }
 0x28f   :  { %v812_v2 = vsub.f32 %v800_v59, %v805_v1 }
 0x291   :  { %v816_v3 = vmul.f32 1.442695, %v812_v2 }
 0x292   :  { %v807_v4 = vpop.xlane.xlu0 %806 }
 0x293   :  { %1289 = vpow2.f32 %v816_v3  ;;  %v813_v5 = vsub.f32 %v801_v56, %v807_v4 }
 0x295   :  { %v818_v6 = vmul.f32 1.442695, %v813_v5 }
 0x297   :  { %1291 = vpow2.f32 %v818_v6 }
 0x29d   :  { %v1290_v7 = vpop.eup %1289 }
 0x29e   :  { %824 = vadd.xlane.f32.xlu0 %v1290_v7 }
 0x2a1   :  { %v1292_v8 = vpop.eup %1291 }
 0x2a2   :  { %826 = vadd.xlane.f32.xlu1 %v1292_v8 }
 0x2ae   :  { %v809_v9 = vpop.xlane.xlu1 %808 }
 0x2af   :  { %v814_v10 = vsub.f32 %v802_v62, %v809_v9 }
 0x2b1   :  { %v820_v11 = vmul.f32 1.442695, %v814_v10 }
 0x2b2   :  { %v811_v12 = vpop.xlane.xlu1 %810 }
 0x2b3   :  { %1293 = vpow2.f32 %v820_v11  ;;  %v815_v13 = vsub.f32 %v803_v63, %v811_v12 }
 0x2b5   :  { %v822_v14 = vmul.f32 1.442695, %v815_v13 }
 0x2b7   :  { %1295 = vpow2.f32 %v822_v14 }
 0x2bd   :  { %v1294_v15 = vpop.eup %1293 }
 0x2be   :  { %828 = vadd.xlane.f32.xlu0 %v1294_v15 }
 0x2c1   :  { %v1296_v16 = vpop.eup %1295 }
 0x2c2   :  { %830 = vadd.xlane.f32.xlu1 %v1296_v16 }
 0x32b   :  { %v825_v17 = vpop.xlane.xlu0 %824 }
 0x32c   :  { %1297 = vrcp.f32 %v825_v17 }
 0x32f   :  { %v827_v18 = vpop.xlane.xlu1 %826 }
 0x330   :  { %1299 = vrcp.f32 %v827_v18 }
 0x336   :  { %v1298_v19 = vpop.eup %1297 }
 0x337   :  { %v836_v20 = vmul.f32 %v1298_v19, %v1290_v7 }
 0x339   :  { %840 = vst [vmem:[#allocation2] sm:$0xff] %v836_v20 }
 0x33a   :  { %v1300_v21 = vpop.eup %1299 }
 0x33b   :  { %v837_v22 = vmul.f32 %v1300_v21, %v1292_v8 }
 0x33d   :  { %841 = vst [vmem:[#allocation2 + $0x8] sm:$0xff] %v837_v22 }
 0x34b   :  { %v829_v23 = vpop.xlane.xlu0 %828 }
 0x34c   :  { %1301 = vrcp.f32 %v829_v23 }
 0x34f   :  { %v831_v24 = vpop.xlane.xlu1 %830 }
 0x350   :  { %1303 = vrcp.f32 %v831_v24 }
 0x356   :  { %v1302_v25 = vpop.eup %1301 }
 0x357   :  { %v838_v26 = vmul.f32 %v1302_v25, %v1294_v15 }
 0x359   :  { %842 = vst [vmem:[#allocation2 + $0x10] sm:$0xff] %v838_v26 }
 0x35a   :  { %v1304_v27 = vpop.eup %1303 }
 0x35b   :  { %v839_v28 = vmul.f32 %v1304_v27, %v1296_v16 }
 0x35d   :  { %843 = vst [vmem:[#allocation2 + $0x18] sm:$0xff] %v839_v28 }
 0x35e   :  { %1316 = shalt.err (!%p1313_p4)
}
 0x35f   :  { %s1317_s29 = scalar_lea.hbm %s1673_s5, 512 }
 0x360   :  { %p1318_p5 = scmp.ne.s32.totalorder %s1673_s5, %s1317_s29  ;;  %p1321_p6 = scmp.lt.u32.totalorder %s1317_s29, %s1673_s5 }
 0x362   :  { %p1323_p7 = pnand %p1321_p6, %p1318_p5 }
 0x364   :  { %1326 = shalt.err (!%p1323_p7)
}
 0x365   :  { %s1331_s3 = smov 128   ;;  %s1332_s9 = smov 8  }
 0x366   :  { %855 = dma.vmem_to_hbm [thread:$0]  %s850_s26, 512, %s1673_s5, [#allocation3], %s1331_s3, %s1331_s3, %s1332_s9  }
 0x367   :  { %1327 = dma.done.wait [#allocation3], 512  }
 0x368   :  { %1328 = vsyncadd [#allocation3], 4294966784 }
 0x369   :  { %859 = vsyncpa [#allocation3], 1 }

</bundles_post_ra>
